<compile_context>
chip_gen: v5e
topology: v5e:2x2
jax: 0.10.0
libtpu: 0.0.40
codegen_flags: <defaults>
</compile_context>

<pallas_src>
import jax
import jax.numpy as jnp
from jax.experimental import pallas as pl
from jax.experimental.pallas import tpu as pltpu

HDIM = 640         # self.hdim for ResNet12 / WRN28
NUM_CLASSES = 64   # self.num_classes
TB_MAX = 2048      # max batch-tile rows; ~6.5 MiB VMEM w/ double-buffering


def _round_up(x, m):
    return (x + m - 1) // m * m


# ----------------------------- Pallas kernel -------------------------------
def _fc_kernel(x_ref, w_ref, b_ref, o_ref):
    # x_ref: (tb, HDIM) bf16   w_ref: (HDIM, 64) bf16   b_ref: (1, 64) f32
    acc = jnp.dot(x_ref[...], w_ref[...], preferred_element_type=jnp.float32)
    o_ref[...] = acc + b_ref[...]


def fc_pallas(feats_bf16, w_t, b_row):
    """feats_bf16: (B, HDIM) bf16; w_t: (HDIM, 64) bf16; b_row: (1, 64) f32."""
    B, H = feats_bf16.shape
    assert H == HDIM and w_t.shape == (HDIM, NUM_CLASSES)
    assert b_row.shape == (1, NUM_CLASSES)

    # Batch tile: aim for >=8 tiles on large B (keeps both v7x TCs busy),
    # multiple of 16 (bf16 sublane packing), capped for VMEM.
    tb = min(TB_MAX, max(16, _round_up(pl.cdiv(B, 8), 16)))
    grid = (pl.cdiv(B, tb),)   # ragged last block handled by Pallas

    return pl.pallas_call(
        _fc_kernel,
        out_shape=jax.ShapeDtypeStruct((B, NUM_CLASSES), jnp.float32),
        grid_spec=pltpu.PrefetchScalarGridSpec(
            num_scalar_prefetch=0,
            grid=grid,
            in_specs=[
                pl.BlockSpec((tb, HDIM), lambda i: (i, 0)),            # pipelined
                pl.BlockSpec((HDIM, NUM_CLASSES), lambda i: (0, 0)),   # VMEM-resident
                pl.BlockSpec((1, NUM_CLASSES), lambda i: (0, 0)),      # VMEM-resident
            ],
            out_specs=pl.BlockSpec((tb, NUM_CLASSES), lambda i: (i, 0)),
        ),
        compiler_params=pltpu.CompilerParams(
            # independent batch tiles -> megacore-shardable on v7x,
            # harmless no-op on single-TC v5e/v6e.
            # (If Mosaic doesn't split across v7x TCs, switch to CORE_PARALLEL
            #  or an explicit core_map mesh.)
            dimension_semantics=("parallel",)),
    )(feats_bf16, w_t, b_row)


# --------------------------- encoder stub (glue) ----------------------------
def stub_encoder(x, proj):
    """Deterministic stand-in for the external encoder.

    x: (B, C, H, W) NCHW -> global average pool -> (B, C) -> project to (B, HDIM).
    Returns bf16 so the cast fuses into the encoder epilogue (no extra HBM pass).
    """
    pooled = jnp.mean(x, axis=(2, 3))                     # (B, C)
    return (pooled @ proj).astype(jnp.bfloat16)           # (B, HDIM) bf16


@jax.jit
def _forward_impl(x, enc_proj, w_t, b_row):
    feats = stub_encoder(x, enc_proj)        # (B, HDIM) bf16, fused cast
    return fc_pallas(feats, w_t, b_row)      # (B, NUM_CLASSES) f32


# ------------------------------- Classifier --------------------------------
class Classifier:
    def __init__(self, key):
        k_w, k_b, k_p = jax.random.split(key, 3)
        # nn.Linear(HDIM, NUM_CLASSES): weight (NUM_CLASSES, HDIM), bias (NUM_CLASSES,)
        bound = 1.0 / (HDIM ** 0.5)
        self.fc_w = jax.random.uniform(k_w, (NUM_CLASSES, HDIM), jnp.float32,
                                       -bound, bound)
        self.fc_b = jax.random.uniform(k_b, (NUM_CLASSES,), jnp.float32,
                                       -bound, bound)
        # deterministic stub-encoder projection (glue, not part of fc hot path)
        self.enc_proj = jax.random.normal(k_p, (4, HDIM), jnp.float32) * 0.05
        # hoisted weight/bias prep: transpose + bf16 cast done ONCE here,
        # not per forward call.
        self.w_t = jnp.asarray(self.fc_w.T, jnp.bfloat16)          # (HDIM, 64) bf16
        self.b_row = self.fc_b.reshape(1, NUM_CLASSES)             # (1, 64) f32

    def forward(self, x):
        return _forward_impl(x, self.enc_proj, self.w_t, self.b_row)


# ---------------------------------- main ------------------------------------
if __name__ == "__main__":
    key = jax.random.PRNGKey(0)
    k_model, k_x = jax.random.split(key)

    clf = Classifier(k_model)

    B, C, H, W = 2, 4, 16, 16
    x = jax.random.normal(k_x, (B, C, H, W), jnp.float32)

    out = clf.forward(x)
    out = jax.block_until_ready(out)
    assert out.shape == (B, NUM_CLASSES)
    assert out.dtype == jnp.float32

    # reference checks in plain JAX
    feats_bf = stub_encoder(x, clf.enc_proj)                 # bf16, same as kernel input
    feats_f32 = jnp.mean(x, axis=(2, 3)) @ clf.enc_proj      # full-f32 features
    # (a) bf16-cast reference (matches kernel input precision) -> tight check
    ref_bf16 = (feats_bf.astype(jnp.float32)
                @ clf.fc_w.astype(jnp.bfloat16).astype(jnp.float32).T) + clf.fc_b
    assert jnp.allclose(out, ref_bf16, atol=2e-3, rtol=2e-3)
    # (b) full-f32 reference -> loose check (bf16 input quantization)
    ref_f32 = feats_f32 @ clf.fc_w.T + clf.fc_b
    assert jnp.allclose(out, ref_f32, atol=2e-2, rtol=2e-2)

    print("KERNEL_OK")
</pallas_src>

<mosaic_0001>
module attributes {stable_mosaic.version = 11 : i64} {
  func.func @_fc_kernel(%arg0: i32, %arg1: memref<16x640xbf16, #tpu.memory_space<vmem>>, %arg2: memref<640x64xbf16, #tpu.memory_space<vmem>>, %arg3: memref<1x64xf32, #tpu.memory_space<vmem>>, %arg4: memref<16x64xf32, #tpu.memory_space<vmem>>) attributes {dimension_semantics = [#tpu.dimension_semantics<parallel>], iteration_bounds = array<i64: 1>, scalar_prefetch = 0 : i64, scratch_operands = 0 : i64, tpu.core_type = #tpu.core_type<tc>, window_params = [{transform_indices = @transform_0, window_bounds = array<i64: 16, 640>}, {pipeline_mode = #tpu.pipeline_mode<synchronous>, transform_indices = @transform_1, window_bounds = array<i64: 640, 64>}, {pipeline_mode = #tpu.pipeline_mode<synchronous>, transform_indices = @transform_2, window_bounds = array<i64: 1, 64>}, {transform_indices = @transform_3, window_bounds = array<i64: 16, 64>}]} {
    %c0 = arith.constant 0 : index
    %c0_0 = arith.constant 0 : index
    %0 = vector.load %arg1[%c0, %c0_0] : memref<16x640xbf16, #tpu.memory_space<vmem>>, vector<16x640xbf16>
    %c0_1 = arith.constant 0 : index
    %c0_2 = arith.constant 0 : index
    %1 = vector.load %arg2[%c0_1, %c0_2] : memref<640x64xbf16, #tpu.memory_space<vmem>>, vector<640x64xbf16>
    %cst = arith.constant dense<0.000000e+00> : vector<16x64xf32>
    %2 = tpu.matmul %0, %1, %cst {dimension_numbers = #tpu.dot_dimension_numbers<[1], [0], [0], [1], [0, 0, 1, 1], [], []>} : vector<16x640xbf16>, vector<640x64xbf16>, vector<16x64xf32> -> vector<16x64xf32>
    %c0_3 = arith.constant 0 : index
    %c0_4 = arith.constant 0 : index
    %3 = vector.load %arg3[%c0_3, %c0_4] : memref<1x64xf32, #tpu.memory_space<vmem>>, vector<1x64xf32>
    %4 = vector.broadcast %3 : vector<1x64xf32> to vector<16x64xf32>
    %5 = arith.addf %2, %4 : vector<16x64xf32>
    %c0_5 = arith.constant 0 : index
    %c0_6 = arith.constant 0 : index
    %6 = vector.load %arg4[%c0_5, %c0_6] : memref<16x64xf32, #tpu.memory_space<vmem>>, vector<16x64xf32>
    tpu.vector_store %arg4[%c0_5, %c0_6], %5 {strides = array<i32>} : memref<16x64xf32, #tpu.memory_space<vmem>>, vector<16x64xf32>,
    return
  }
  func.func @transform_0(%arg0: i32) -> (i32, i32) {
    %c0_i32 = arith.constant 0 : i32
    %c0_i32_0 = arith.constant 0 : i32
    return %arg0, %c0_i32 : i32, i32
  }
  func.func @transform_1(%arg0: i32) -> (i32, i32) {
    %c0_i32 = arith.constant 0 : i32
    %c0_i32_0 = arith.constant 0 : i32
    %c0_i32_1 = arith.constant 0 : i32
    return %c0_i32, %c0_i32_0 : i32, i32
  }
  func.func @transform_2(%arg0: i32) -> (i32, i32) {
    %c0_i32 = arith.constant 0 : i32
    %c0_i32_0 = arith.constant 0 : i32
    %c0_i32_1 = arith.constant 0 : i32
    return %c0_i32, %c0_i32_0 : i32, i32
  }
  func.func @transform_3(%arg0: i32) -> (i32, i32) {
    %c0_i32 = arith.constant 0 : i32
    %c0_i32_0 = arith.constant 0 : i32
    return %arg0, %c0_i32 : i32, i32
  }
}

</mosaic_0001>

<bundles_post_ra>
// kernel: _forward_impl.1
= control target key start
LH: loop header
LB: loop body
LE: loop exit
PB: predicated region body
PF: predicated region fallthrough
CT: control target
= control target key end

     0   :  { %8 = vsyncpa [#allocation3], 0  ;;  %vm450_vm0 = vcmask 523264   ;;  %s874_s0 = inlined_call_operand.vmem [shape: bf16[2,640], index: 0, kind: input, shape index: {}]   ;;  %s875_s1 = inlined_call_operand.vmem [shape: bf16[640,64], index: 1, kind: input, shape index: {}]   ;;  %s876_s2 = inlined_call_operand.vmem [shape: f32[1,64], index: 2, kind: input, shape index: {}]   ;;  %s877_s3 = inlined_call_operand.hbm [shape: f32[2,64], index: 3, kind: output, shape index: {}]  }
   0x1   :  { %v638_v0 = vld [vmem:[%s875_s1 + $0x38] sm:$0xff]  ;;  %v637_v4 = vld [vmem:[%s875_s1 + $0x30] sm:$0xff]  ;;  %v636_v8 = vld [vmem:[%s875_s1 + $0x28] sm:$0xff] }
   0x2   :  { %v654_v1 = vld [vmem:[%s875_s1 + $0xb8] sm:$0xff]  ;;  %380 = vmatpush.bf16.msra.mxu0 %v638_v0  ;;  %v653_v5 = vld [vmem:[%s875_s1 + $0xb0] sm:$0xff]  ;;  %v652_v9 = vld [vmem:[%s875_s1 + $0xa8] sm:$0xff] }
   0x3   :  { %v662_v2 = vld [vmem:[%s875_s1 + $0xf8] sm:$0xff]  ;;  %408 = vmatpush.bf16.msra.mxu2 %v654_v1  ;;  %v661_v6 = vld [vmem:[%s875_s1 + $0xf0] sm:$0xff]  ;;  %v660_v10 = vld [vmem:[%s875_s1 + $0xe8] sm:$0xff] }
   0x4   :  { %v646_v3 = vld [vmem:[%s875_s1 + $0x78] sm:$0xff]  ;;  %422 = vmatpush.bf16.msra.mxu3 %v662_v2  ;;  %v645_v7 = vld [vmem:[%s875_s1 + $0x70] sm:$0xff]  ;;  %v644_v11 = vld [vmem:[%s875_s1 + $0x68] sm:$0xff] }
   0x5   :  { %394 = vmatpush.bf16.msra.mxu1 %v646_v3  ;;  %v635_v12 = vld [vmem:[%s875_s1 + $0x20] sm:$0xff]  ;;  %v634_v18 = vld [vmem:[%s875_s1 + $0x18] sm:$0xff]  ;;  %v17_v20 = vld [vmem:[%s874_s0 + $0xa] sm:$0x1f] }
   0x6   :  { %381 = vmatpush.bf16.msra.mxu0 %v637_v4  ;;  %v651_v13 = vld [vmem:[%s875_s1 + $0xa0] sm:$0xff]  ;;  %v650_v19 = vld [vmem:[%s875_s1 + $0x98] sm:$0xff]  ;;  %v18_v23 = vld [vmem:[%s874_s0 + $0xf] sm:$0x1f]  ;;  %114 = vst [vmem:[#allocation1 + $0x2] ss:$9 sm:$0xff] %v17_v20 }
   0x7   :  { %409 = vmatpush.bf16.msra.mxu2 %v653_v5  ;;  %v659_v14 = vld [vmem:[%s875_s1 + $0xe0] sm:$0xff]  ;;  %v658_v21 = vld [vmem:[%s875_s1 + $0xd8] sm:$0xff]  ;;  %117 = vst [vmem:[#allocation1 + $0x3] ss:$9 sm:$0xff] %v18_v23  ;;  %v633_v27 = vld [vmem:[%s875_s1 + $0x10] sm:$0xff] }
   0x8   :  { %423 = vmatpush.bf16.msra.mxu3 %v661_v6  ;;  %v643_v15 = vld [vmem:[%s875_s1 + $0x60] sm:$0xff]  ;;  %v642_v22 = vld [vmem:[%s875_s1 + $0x58] sm:$0xff]  ;;  %v649_v28 = vld [vmem:[%s875_s1 + $0x90] sm:$0xff] }
   0x9   :  { %395 = vmatpush.bf16.msra.mxu1 %v645_v7  ;;  %v15_v16 = vld [vmem:[%s874_s0] sm:$0x1f]  ;;  %v16_v17 = vld [vmem:[%s874_s0 + $0x5] sm:$0x1f]  ;;  %v19_v24 = vld [vmem:[%s874_s0 + $0x14] sm:$0x1f] }
   0xa   :  { %382 = vmatpush.bf16.msra.mxu0 %v636_v8  ;;  %108 = vst [vmem:[#allocation1] ss:$9 sm:$0xff] %v15_v16  ;;  %v20_v25 = vld [vmem:[%s874_s0 + $0x19] sm:$0x1f]  ;;  %v21_v26 = vld [vmem:[%s874_s0 + $0x1e] sm:$0x1f] }
   0xb   :  { %410 = vmatpush.bf16.msra.mxu2 %v652_v9  ;;  %111 = vst [vmem:[#allocation1 + $0x1] ss:$9 sm:$0xff] %v16_v17  ;;  %v22_v29 = vld [vmem:[%s874_s0 + $0x23] sm:$0x1f]  ;;  %v657_v30 = vld [vmem:[%s875_s1 + $0xd0] sm:$0xff]  ;;  %v632_v32 = vld [vmem:[%s875_s1 + $0x8] sm:$0xff] }
   0xc   :  { %424 = vmatpush.bf16.msra.mxu3 %v660_v10  ;;  %120 = vst [vmem:[#allocation1 + $0x4] ss:$9 sm:$0xff] %v19_v24  ;;  %v641_v31 = vld [vmem:[%s875_s1 + $0x50] sm:$0xff]  ;;  %v648_v33 = vld [vmem:[%s875_s1 + $0x88] sm:$0xff]  ;;  %v631_v36 = vld [vmem:[%s875_s1] sm:$0xff] }
   0xd   :  { %396 = vmatpush.bf16.msra.mxu1 %v644_v11  ;;  %123 = vst [vmem:[#allocation1 + $0x5] ss:$9 sm:$0xff] %v20_v25  ;;  %v656_v34 = vld [vmem:[%s875_s1 + $0xc8] sm:$0xff]  ;;  %v647_v37 = vld [vmem:[%s875_s1 + $0x80] sm:$0xff]  ;;  %v670_v38 = vld [vmem:[%s875_s1 + $0x138] sm:$0xff] }
   0xe   :  { %383 = vmatpush.bf16.msra.mxu0 %v635_v12  ;;  %126 = vst [vmem:[#allocation1 + $0x6] ss:$9 sm:$0xff] %v21_v26  ;;  %v640_v35 = vld [vmem:[%s875_s1 + $0x48] sm:$0xff]  ;;  %v655_v39 = vld [vmem:[%s875_s1 + $0xc0] sm:$0xff]  ;;  %v669_v43 = vld [vmem:[%s875_s1 + $0x130] sm:$0xff] }
   0xf   :  { %411 = vmatpush.bf16.msra.mxu2 %v651_v13  ;;  %129 = vst [vmem:[#allocation1 + $0x7] ss:$9 sm:$0xff] %v22_v29  ;;  %v639_v40 = vld [vmem:[%s875_s1 + $0x40] sm:$0xff]  ;;  %v668_v46 = vld [vmem:[%s875_s1 + $0x128] sm:$0xff]  ;;  %v666_v48 = vld [vmem:[%s875_s1 + $0x118] sm:$0xff] }
  0x10   :  { %425 = vmatpush.bf16.msra.mxu3 %v659_v14  ;;  %v667_v47 = vld [vmem:[%s875_s1 + $0x120] sm:$0xff]  ;;  %v665_v49 = vld [vmem:[%s875_s1 + $0x110] sm:$0xff]  ;;  %v664_v50 = vld [vmem:[%s875_s1 + $0x108] sm:$0xff] }
  0x11   :  { %397 = vmatpush.bf16.msra.mxu1 %v643_v15  ;;  %v663_v51 = vld [vmem:[%s875_s1 + $0x100] sm:$0xff] }
  0x12   :  { %384 = vmatpush.bf16.msra.mxu0 %v634_v18  ;;  %v674_v54 = vld [vmem:[%s876_s2] ss:$0 sm:$0xff] }
  0x13   :  { %412 = vmatpush.bf16.msra.mxu2 %v650_v19 }
  0x14   :  { %426 = vmatpush.bf16.msra.mxu3 %v658_v21 }
  0x15   :  { %398 = vmatpush.bf16.msra.mxu1 %v642_v22 }
  0x16   :  { %385 = vmatpush.bf16.msra.mxu0 %v633_v27  ;;  %v132_v41 = vld [vmem:[#allocation1 + $0x12] sm:$0xff]  ;;  %v130_v42 = vld [vmem:[#allocation1] sm:$0xff]  ;;  %v131_v45 = vld [vmem:[#allocation1 + $0x9] sm:$0xff] }
  0x17   :  { %413 = vmatpush.bf16.msra.mxu2 %v649_v28  ;;  %v133_v44 = vld [vmem:[#allocation1 + $0x1b] sm:$0xff]  ;;  %v134_v52 = vld [vmem:[#allocation1 + $0x24] sm:$0xff] }
  0x18   :  { %427 = vmatpush.bf16.msra.mxu3 %v657_v30 }
  0x19   :  { %399 = vmatpush.bf16.msra.mxu1 %v641_v31 }
  0x1a   :  { %386 = vmatpush.bf16.msra.mxu0 %v632_v32 }
  0x1b   :  { %414 = vmatpush.bf16.msra.mxu2 %v648_v33 }
  0x1c   :  { %428 = vmatpush.bf16.msra.mxu3 %v656_v34 }
  0x1d   :  { %400 = vmatpush.bf16.msra.mxu1 %v640_v35 }
  0x1e   :  { %387 = vmatpush.bf16.msra.mxu0 %v631_v36 }
  0x1f   :  { %415 = vmatpush.bf16.msra.mxu2 %v647_v37 }
  0x20   :  { %429 = vmatpush.bf16.msra.mxu3 %v655_v39 }
  0x21   :  { %401 = vmatpush.bf16.msra.mxu1 %v639_v40  ;;  %388 = vmatmul.bf16.vlgmr.msra.gmra.mxu0 %v130_v42 }
  0x22   :  { %436 = vmatpush.bf16.msrb.mxu0 %v670_v38  ;;  %416 = vmatmul.bf16.vlgmr.msra.gmra.mxu2 %v132_v41 }
  0x23   :  { %430 = vmatmul.bf16.vlgmr.msra.gmra.mxu3 %v133_v44 }
  0x24   :  { %402 = vmatmul.bf16.vlgmr.msra.gmra.mxu1 %v131_v45 }
  0x26   :  { %437 = vmatpush.bf16.msrb.mxu0 %v669_v43 }
  0x2a   :  { %438 = vmatpush.bf16.msrb.mxu0 %v668_v46 }
  0x2e   :  { %439 = vmatpush.bf16.msrb.mxu0 %v667_v47 }
  0x32   :  { %440 = vmatpush.bf16.msrb.mxu0 %v666_v48 }
  0x36   :  { %441 = vmatpush.bf16.msrb.mxu0 %v665_v49 }
  0x3a   :  { %442 = vmatpush.bf16.msrb.mxu0 %v664_v50 }
  0x3e   :  { %443 = vmatpush.bf16.msrb.mxu0 %v663_v51 }
  0x41   :  { %444 = vmatmul.bf16.vlgmr.msrb.gmra.mxu0 %v134_v52 }
  0x9e   :  { %v389_v53 = vpop.f32.mrf.mxu0 }
  0x9f   :  { %v390_v56 = vadd.f32 %v674_v54, %v389_v53 }
  0xa1   :  { %v403_v55 = vpop.f32.mrf.mxu1 }
  0xa2   :  { %v404_v58 = vadd.f32 %v403_v55, %v390_v56 }
  0xa5   :  { %v417_v57 = vpop.f32.mrf.mxu2 }
  0xa6   :  { %v391_v59 = vpop.f32.mrf.mxu0  ;;  %v431_v60 = vpop.f32.mrf.mxu3  ;;  %v418_v61 = vadd.f32 %v417_v57, %v404_v58 }
  0xa7   :  { %v392_v62 = vadd.f32 %v674_v54, %v391_v59 }
  0xa8   :  { %v432_v0 = vadd.f32 %v431_v60, %v418_v61 }
  0xa9   :  { %v405_v63 = vpop.f32.mrf.mxu1 }
  0xaa   :  { %v406_v1 = vadd.f32 %v405_v63, %v392_v62 }
  0xad   :  { %v419_v2 = vpop.f32.mrf.mxu2 }
  0xae   :  { %v420_v5 = vadd.f32 %v419_v2, %v406_v1  ;;  %v433_v6 = vpop.f32.mrf.mxu3 }
  0xb0   :  { %v434_v7 = vadd.f32 %v433_v6, %v420_v5 }
  0xbe   :  { %v445_v3 = vpop.f32.mrf.mxu0 }
  0xbf   :  { %v446_v4 = vadd.f32 %v445_v3, %v432_v0 }
  0xc1   :  { %451 = vst.msk [vmem:[#allocation2] sm:$0xff] %vm450_vm0, %v446_v4 }
  0xc6   :  { %v447_v8 = vpop.f32.mrf.mxu0 }
  0xc7   :  { %v448_v9 = vadd.f32 %v447_v8, %v434_v7 }
  0xc9   :  { %452 = vst.msk [vmem:[#allocation2 + $0x8] sm:$0xff] %vm450_vm0, %v448_v9 }
  0xca   :  { %456 = vsyncadd [#allocation3], 224  ;;  %s459_s27 = sshll.u32 %s877_s3, 4  ;;  %s701_s28 = smov [#allocation2]   ;;  %s460_s27 = int_to_ptr.hbm [resolvable:$true] %s459_s27 }
  0xcb   :  { %s457_s29 = sshll.u32 %s701_s28, 4  ;;  %s702_s30 = smov 32   ;;  %s458_s29 = int_to_ptr.vmem [resolvable:$true] %s457_s29 }
  0xcc   :  { %s703_s4 = smov 2  }
  0xcd   :  { %465 = dma.vmem_to_hbm [thread:$0]  %s458_s29, 32, %s460_s27, [#allocation3], %s702_s30, %s702_s30, %s703_s4  }
  0xce   :  { %699 = dma.done.wait [#allocation3], 256  }
  0xcf   :  { %700 = vsyncadd [#allocation3], 4294967040 }
  0xd0   :  { %470 = vsyncpa [#allocation3], 1 }

</bundles_post_ra>
